<compile_context>
chip_gen: v5e
topology: v5e:2x2
jax: 0.10.0
libtpu: 0.0.40
codegen_flags: <defaults>
</compile_context>

<pallas_src>
import functools

import numpy as np
import jax
import jax.numpy as jnp
from jax import lax
from jax.experimental import pallas as pl
from jax.experimental.pallas import tpu as pltpu

_E = 2.718281828459045  # e, as a Python constant (no per-iteration exp(1))


def _maxent_newton_kernel(var_ref, lam0_ref, c2min_ref, c2max_ref, c2_ref,
                          lam_ref, it_ref, *, max_iter, tol, n_pad, chunk_rows):
    var = var_ref[0]
    lam0 = lam0_ref[0]
    c2_min = c2min_ref[0]
    c2_max = c2max_ref[0]

    rows, lanes = c2_ref.shape            # static
    n_chunks = rows // chunk_rows         # rows is padded to a chunk multiple
    tol_f = jnp.float32(tol)
    n_pad_f = jnp.float32(n_pad)

    def stats(lam):
        # Scalar shift m >= max(-lam*C2) over every resident element (the
        # wrapper computes c2_min/c2_max over the padded array, so padded
        # zeros are covered too) -> exp never overflows.  All of s0/s2/s4 are
        # scaled by exp(-m), and fx/dfx only use the ratios, so the result is
        # shift-invariant.
        neg_lam = -lam
        m = jnp.maximum(neg_lam * c2_min, neg_lam * c2_max)

        def chunk_update(blk, carry):
            a0, a2, a4 = carry
            w = jnp.exp(neg_lam * blk - m)      # one EUP pass per chunk
            t2 = blk * w                        # reused for s2 and s4
            return a0 + w, a2 + t2, a4 + blk * t2

        zeros = jnp.zeros((chunk_rows, lanes), jnp.float32)
        init = (zeros, zeros, zeros)
        if n_chunks == 1:
            a0, a2, a4 = chunk_update(c2_ref[...], init)
        else:
            def chunk_loop_body(ci, carry):
                r0 = pl.multiple_of(ci * chunk_rows, chunk_rows)
                return chunk_update(c2_ref[pl.ds(r0, chunk_rows), :], carry)
            if n_chunks <= 8:
                a0, a2, a4 = lax.fori_loop(0, n_chunks, chunk_loop_body, init,
                                           unroll=True)
            else:
                a0, a2, a4 = lax.fori_loop(0, n_chunks, chunk_loop_body, init)

        # Single cross-lane reduce per Newton iteration (per accumulator).
        s0 = jnp.sum(a0)
        if n_pad:
            # Padded C2 entries are exactly 0 -> each contributes exp(-m) to
            # s0 and nothing to s2/s4; remove them with one scalar term.
            # (exp of a (1,1) vector, not a bare scalar, to stay on the EUP
            # vector path.)
            pad_w = jnp.sum(jnp.exp(jnp.full((1, 1), -m, jnp.float32)))
            s0 = s0 - n_pad_f * pad_w
        s2 = jnp.sum(a2)
        s4 = jnp.sum(a4)

        inv_s0 = 1.0 / s0                      # one scalar divide, reused
        fx = _E * (var - s2 * inv_s0)
        dfx = _E * (s4 * inv_s0 + 1.0)
        return fx, dfx

    def cond(carry):
        # Matches PyTorch: body runs while |fx(lam)| > tol; post-increment
        # "if i > max_iter: break" allows at most max_iter+1 body executions.
        _, fx_v, _, i = carry
        return jnp.logical_and(jnp.abs(fx_v) > tol_f, i <= max_iter)

    def newton_body(carry):
        lam, fx_v, dfx_v, i = carry
        lam_new = lam - fx_v / dfx_v
        fx_new, dfx_new = stats(lam_new)
        return lam_new, fx_new, dfx_new, i + jnp.int32(1)

    fx0, dfx0 = stats(lam0)
    lam_f, _, _, iters = lax.while_loop(
        cond, newton_body, (lam0, fx0, dfx0, jnp.int32(0)))
    lam_ref[0] = lam_f
    it_ref[0] = iters


def variance_maxent_forward(x, mu, var, lam=0.0, max_iter=100, tol=1e-15):
    """Returns (lam, num_iterations) — the value the PyTorch module stores in self.lam."""
    x_flat = jnp.asarray(x, jnp.float32).reshape(-1)
    n = x_flat.shape[0]

    lanes = 128
    chunk_rows = 8                              # one vreg per chunk/accumulator
    rows = -(-n // lanes)                       # ceil(n / 128)
    rows = max(chunk_rows, -(-rows // chunk_rows) * chunk_rows)
    padded = rows * lanes
    n_pad = padded - n

    # Precompute C2 once (one XLA pass) so only ONE N-sized array is resident
    # in the kernel.  Padding C2 with zeros == padding x with mu.
    c2 = jnp.square(x_flat - jnp.float32(mu))
    c2p = jnp.pad(c2, (0, n_pad)).reshape(rows, lanes)
    # min/max over the *padded* array: gives a valid exponent-shift bound for
    # every resident element (pads included), computed once, outside the loop.
    c2_min = jnp.reshape(jnp.min(c2p), (1,)).astype(jnp.float32)
    c2_max = jnp.reshape(jnp.max(c2p), (1,)).astype(jnp.float32)

    var_a = jnp.full((1,), var, jnp.float32)
    lam_a = jnp.full((1,), lam, jnp.float32)

    # Size the scoped VMEM limit from the padded N: resident C2 * 1.5 + slack,
    # capped near what v5e/v6e physically allow.  (v7x physical VMEM is 64 MiB;
    # see TODO above for the streaming path for very large x.)
    resident_bytes = padded * 4
    vmem_limit = int(min(100 * 1024 * 1024,
                         max(8 * 1024 * 1024,
                             int(resident_bytes * 1.5) + 4 * 1024 * 1024)))

    kernel = functools.partial(_maxent_newton_kernel,
                               max_iter=int(max_iter), tol=float(tol),
                               n_pad=int(n_pad), chunk_rows=chunk_rows)
    lam_out, iters = pl.pallas_call(
        kernel,
        out_shape=(jax.ShapeDtypeStruct((1,), jnp.float32),
                   jax.ShapeDtypeStruct((1,), jnp.int32)),
        in_specs=[
            pl.BlockSpec(memory_space=pltpu.MemorySpace.SMEM),   # var
            pl.BlockSpec(memory_space=pltpu.MemorySpace.SMEM),   # lam0
            pl.BlockSpec(memory_space=pltpu.MemorySpace.SMEM),   # c2_min
            pl.BlockSpec(memory_space=pltpu.MemorySpace.SMEM),   # c2_max
            pl.BlockSpec(memory_space=pltpu.MemorySpace.VMEM),   # C2 (R, 128)
        ],
        out_specs=(
            pl.BlockSpec(memory_space=pltpu.MemorySpace.SMEM),
            pl.BlockSpec(memory_space=pltpu.MemorySpace.SMEM),
        ),
        compiler_params=pltpu.CompilerParams(vmem_limit_bytes=vmem_limit),
    )(var_a, lam_a, c2_min, c2_max, c2p)
    return lam_out[0], iters[0]


def _numpy_reference(x, mu, var, lam=0.0, max_iter=100, tol=1e-15):
    # Faithful float64 transcription of VarianceMaxEnt_Model.forward.
    x = np.asarray(x, np.float64)
    mu = float(mu)
    var = float(var)
    C2 = (x - mu) ** 2

    def fx(l):
        return var / np.exp(-1) - np.dot(C2, np.exp(-l * C2)) / np.exp(-1 - l * C2).sum()

    def dxfx(l):
        return (np.sum((C2 ** 2) * np.exp(-l * C2) / np.exp(-1 - l * C2).sum())
                + np.sum(np.exp(-l * C2) / np.exp(-1 - l * C2).sum()))

    i = 0
    old_lam = lam
    while abs(fx(lam)) > tol:
        lam = old_lam - fx(lam) / dxfx(lam)
        old_lam = lam
        i += 1
        if i > max_iter:
            break
    return lam, i


if __name__ == "__main__":
    key = jax.random.PRNGKey(0)
    N = 256  # sample vector length
    x = jax.random.normal(key, (N,), dtype=jnp.float32)

    x_np = np.asarray(x)
    mu = float(x_np.mean())
    # Target variance slightly different from the sample variance so the
    # Newton loop actually iterates (fx(0) != 0).
    var = 0.8 * float(((x_np - mu) ** 2).mean())

    # tol=1e-6: an f32-resolvable threshold (the module default 1e-15 is below
    # f32 resolution of fx and would just burn max_iter+1 iterations).
    lam, iters = variance_maxent_forward(x, mu, var, lam=0.0, max_iter=100, tol=1e-6)
    lam = jax.block_until_ready(lam)
    iters = jax.block_until_ready(iters)

    lam_ref, _ = _numpy_reference(x_np, mu, var, lam=0.0, max_iter=100, tol=1e-6)

    assert np.isfinite(float(lam)), "kernel produced non-finite lambda"
    assert abs(float(lam) - float(lam_ref)) <= 5e-2 * max(1.0, abs(float(lam_ref))), (
        f"mismatch: kernel lam={float(lam)}, reference lam={float(lam_ref)}")

    print("KERNEL_OK")
</pallas_src>

<mosaic_0001>
module attributes {stable_mosaic.version = 11 : i64} {
  func.func @_maxent_newton_kernel(%arg0: memref<1xf32, #tpu.memory_space<smem>>, %arg1: memref<1xf32, #tpu.memory_space<smem>>, %arg2: memref<1xf32, #tpu.memory_space<smem>>, %arg3: memref<1xf32, #tpu.memory_space<smem>>, %arg4: memref<8x128xf32, #tpu.memory_space<vmem>>, %arg5: memref<1xf32, #tpu.memory_space<smem>>, %arg6: memref<1xi32, #tpu.memory_space<smem>>) attributes {dimension_semantics = [], scalar_prefetch = 0 : i64, scratch_operands = 0 : i64, tpu.core_type = #tpu.core_type<tc>} {
    %c0 = arith.constant 0 : index
    %0 = memref.load %arg0[%c0] : memref<1xf32, #tpu.memory_space<smem>>
    %c0_0 = arith.constant 0 : index
    %1 = memref.load %arg1[%c0_0] : memref<1xf32, #tpu.memory_space<smem>>
    %c0_1 = arith.constant 0 : index
    %2 = memref.load %arg2[%c0_1] : memref<1xf32, #tpu.memory_space<smem>>
    %c0_2 = arith.constant 0 : index
    %3 = memref.load %arg3[%c0_2] : memref<1xf32, #tpu.memory_space<smem>>
    %cst = arith.constant 0.000000e+00 : f32
    %4 = arith.subf %cst, %1 : f32
    %5 = arith.mulf %4, %2 : f32
    %6 = arith.mulf %4, %3 : f32
    %7 = arith.maximumf %5, %6 : f32
    %cst_3 = arith.constant 0.000000e+00 : f32
    %8 = vector.broadcast %cst_3 : f32 to vector<8x128xf32>
    %c0_4 = arith.constant 0 : index
    %c0_5 = arith.constant 0 : index
    %9 = vector.load %arg4[%c0_4, %c0_5] : memref<8x128xf32, #tpu.memory_space<vmem>>, vector<8x128xf32>
    %10 = vector.broadcast %4 : f32 to vector<8x128xf32>
    %11 = arith.mulf %10, %9 : vector<8x128xf32>
    %12 = vector.broadcast %7 : f32 to vector<8x128xf32>
    %13 = arith.subf %11, %12 : vector<8x128xf32>
    %14 = math.exp %13 : vector<8x128xf32>
    %15 = arith.mulf %9, %14 : vector<8x128xf32>
    %16 = arith.addf %8, %14 : vector<8x128xf32>
    %17 = arith.addf %8, %15 : vector<8x128xf32>
    %18 = arith.mulf %9, %15 : vector<8x128xf32>
    %19 = arith.addf %8, %18 : vector<8x128xf32>
    %20 = vector.shape_cast %16 : vector<8x128xf32> to vector<1x8x128xf32>
    %cst_6 = arith.constant dense<0.000000e+00> : vector<1xf32>
    %21 = vector.multi_reduction <add>, %20, %cst_6 [1, 2] : vector<1x8x128xf32> to vector<1xf32>
    %22 = vector.shape_cast %21 : vector<1xf32> to vector<1x1x1xf32>
    %23 = vector.extract %22[0, 0, 0] : f32 from vector<1x1x1xf32>
    %cst_7 = arith.constant 0.000000e+00 : f32
    %24 = arith.subf %cst_7, %7 : f32
    %25 = vector.broadcast %24 : f32 to vector<1x1xf32>
    %26 = math.exp %25 : vector<1x1xf32>
    %27 = vector.shape_cast %26 : vector<1x1xf32> to vector<1x1x1xf32>
    %cst_8 = arith.constant dense<0.000000e+00> : vector<1xf32>
    %28 = vector.multi_reduction <add>, %27, %cst_8 [1, 2] : vector<1x1x1xf32> to vector<1xf32>
    %29 = vector.shape_cast %28 : vector<1xf32> to vector<1x1x1xf32>
    %30 = vector.extract %29[0, 0, 0] : f32 from vector<1x1x1xf32>
    %cst_9 = arith.constant 7.680000e+02 : f32
    %31 = arith.mulf %cst_9, %30 : f32
    %32 = arith.subf %23, %31 : f32
    %33 = vector.shape_cast %17 : vector<8x128xf32> to vector<1x8x128xf32>
    %cst_10 = arith.constant dense<0.000000e+00> : vector<1xf32>
    %34 = vector.multi_reduction <add>, %33, %cst_10 [1, 2] : vector<1x8x128xf32> to vector<1xf32>
    %35 = vector.shape_cast %34 : vector<1xf32> to vector<1x1x1xf32>
    %36 = vector.extract %35[0, 0, 0] : f32 from vector<1x1x1xf32>
    %37 = vector.shape_cast %19 : vector<8x128xf32> to vector<1x8x128xf32>
    %cst_11 = arith.constant dense<0.000000e+00> : vector<1xf32>
    %38 = vector.multi_reduction <add>, %37, %cst_11 [1, 2] : vector<1x8x128xf32> to vector<1xf32>
    %39 = vector.shape_cast %38 : vector<1xf32> to vector<1x1x1xf32>
    %40 = vector.extract %39[0, 0, 0] : f32 from vector<1x1x1xf32>
    %cst_12 = arith.constant 1.000000e+00 : f32
    %41 = arith.divf %cst_12, %32 : f32
    %42 = arith.mulf %36, %41 : f32
    %43 = arith.subf %0, %42 : f32
    %cst_13 = arith.constant 2.71828175 : f32
    %44 = arith.mulf %cst_13, %43 : f32
    %45 = arith.mulf %40, %41 : f32
    %cst_14 = arith.constant 1.000000e+00 : f32
    %46 = arith.addf %45, %cst_14 : f32
    %cst_15 = arith.constant 2.71828175 : f32
    %47 = arith.mulf %cst_15, %46 : f32
    %cst_16 = arith.constant 9.99999997E-7 : f32
    %cst_17 = arith.constant 7.680000e+02 : f32
    %c0_i32 = arith.constant 0 : i32
    %48:4 = scf.while (%arg7 = %1, %arg8 = %44, %arg9 = %47, %arg10 = %c0_i32) : (f32, f32, f32, i32) -> (f32, f32, f32, i32) {
      %51 = math.absf %arg8 : f32
      %52 = arith.cmpf ogt, %51, %cst_16 : f32
      %c100_i32 = arith.constant 100 : i32
      %53 = arith.cmpi sle, %arg10, %c100_i32 : i32
      %54 = arith.andi %52, %53 : i1
      scf.condition(%54) %arg7, %arg8, %arg9, %arg10 : f32, f32, f32, i32
    } do {
    ^bb0(%arg7: f32, %arg8: f32, %arg9: f32, %arg10: i32):
      %51 = arith.divf %arg8, %arg9 : f32
      %52 = arith.subf %arg7, %51 : f32
      %cst_20 = arith.constant 0.000000e+00 : f32
      %53 = arith.subf %cst_20, %52 : f32
      %54 = arith.mulf %53, %2 : f32
      %55 = arith.mulf %53, %3 : f32
      %56 = arith.maximumf %54, %55 : f32
      %cst_21 = arith.constant 0.000000e+00 : f32
      %57 = vector.broadcast %cst_21 : f32 to vector<8x128xf32>
      %c0_22 = arith.constant 0 : index
      %c0_23 = arith.constant 0 : index
      %58 = vector.load %arg4[%c0_22, %c0_23] : memref<8x128xf32, #tpu.memory_space<vmem>>, vector<8x128xf32>
      %59 = vector.broadcast %53 : f32 to vector<8x128xf32>
      %60 = arith.mulf %59, %58 : vector<8x128xf32>
      %61 = vector.broadcast %56 : f32 to vector<8x128xf32>
      %62 = arith.subf %60, %61 : vector<8x128xf32>
      %63 = math.exp %62 : vector<8x128xf32>
      %64 = arith.mulf %58, %63 : vector<8x128xf32>
      %65 = arith.addf %57, %63 : vector<8x128xf32>
      %66 = arith.addf %57, %64 : vector<8x128xf32>
      %67 = arith.mulf %58, %64 : vector<8x128xf32>
      %68 = arith.addf %57, %67 : vector<8x128xf32>
      %69 = vector.shape_cast %65 : vector<8x128xf32> to vector<1x8x128xf32>
      %cst_24 = arith.constant dense<0.000000e+00> : vector<1xf32>
      %70 = vector.multi_reduction <add>, %69, %cst_24 [1, 2] : vector<1x8x128xf32> to vector<1xf32>
      %71 = vector.shape_cast %70 : vector<1xf32> to vector<1x1x1xf32>
      %72 = vector.extract %71[0, 0, 0] : f32 from vector<1x1x1xf32>
      %cst_25 = arith.constant 0.000000e+00 : f32
      %73 = arith.subf %cst_25, %56 : f32
      %74 = vector.broadcast %73 : f32 to vector<1x1xf32>
      %75 = math.exp %74 : vector<1x1xf32>
      %76 = vector.shape_cast %75 : vector<1x1xf32> to vector<1x1x1xf32>
      %cst_26 = arith.constant dense<0.000000e+00> : vector<1xf32>
      %77 = vector.multi_reduction <add>, %76, %cst_26 [1, 2] : vector<1x1x1xf32> to vector<1xf32>
      %78 = vector.shape_cast %77 : vector<1xf32> to vector<1x1x1xf32>
      %79 = vector.extract %78[0, 0, 0] : f32 from vector<1x1x1xf32>
      %80 = arith.mulf %cst_17, %79 : f32
      %81 = arith.subf %72, %80 : f32
      %82 = vector.shape_cast %66 : vector<8x128xf32> to vector<1x8x128xf32>
      %cst_27 = arith.constant dense<0.000000e+00> : vector<1xf32>
      %83 = vector.multi_reduction <add>, %82, %cst_27 [1, 2] : vector<1x8x128xf32> to vector<1xf32>
      %84 = vector.shape_cast %83 : vector<1xf32> to vector<1x1x1xf32>
      %85 = vector.extract %84[0, 0, 0] : f32 from vector<1x1x1xf32>
      %86 = vector.shape_cast %68 : vector<8x128xf32> to vector<1x8x128xf32>
      %cst_28 = arith.constant dense<0.000000e+00> : vector<1xf32>
      %87 = vector.multi_reduction <add>, %86, %cst_28 [1, 2] : vector<1x8x128xf32> to vector<1xf32>
      %88 = vector.shape_cast %87 : vector<1xf32> to vector<1x1x1xf32>
      %89 = vector.extract %88[0, 0, 0] : f32 from vector<1x1x1xf32>
      %cst_29 = arith.constant 1.000000e+00 : f32
      %90 = arith.divf %cst_29, %81 : f32
      %91 = arith.mulf %85, %90 : f32
      %92 = arith.subf %0, %91 : f32
      %cst_30 = arith.constant 2.71828175 : f32
      %93 = arith.mulf %cst_30, %92 : f32
      %94 = arith.mulf %89, %90 : f32
      %cst_31 = arith.constant 1.000000e+00 : f32
      %95 = arith.addf %94, %cst_31 : f32
      %cst_32 = arith.constant 2.71828175 : f32
      %96 = arith.mulf %cst_32, %95 : f32
      %c1_i32 = arith.constant 1 : i32
      %97 = arith.addi %arg10, %c1_i32 : i32
      scf.yield %52, %93, %96, %97 : f32, f32, f32, i32
    }
    %c0_18 = arith.constant 0 : index
    %49 = memref.load %arg5[%c0_18] : memref<1xf32, #tpu.memory_space<smem>>
    memref.store %48#0, %arg5[%c0_18] : memref<1xf32, #tpu.memory_space<smem>>
    %c0_19 = arith.constant 0 : index
    %50 = memref.load %arg6[%c0_19] : memref<1xi32, #tpu.memory_space<smem>>
    memref.store %48#3, %arg6[%c0_19] : memref<1xi32, #tpu.memory_space<smem>>
    return
  }
}

</mosaic_0001>

<bundles_post_ra>
// kernel: tpu_custom_call.1
= control target key start
LH: loop header
LB: loop body
LE: loop exit
PB: predicated region body
PF: predicated region fallthrough
CT: control target
= control target key end

     0   :  { %16 = vsyncpa [#allocation7], 0  ;;  %s581_s0 = inlined_call_operand.<no memory space> [shape: f32[1], index: 0, kind: input, shape index: {}]   ;;  %s582_s1 = inlined_call_operand.<no memory space> [shape: f32[1], index: 1, kind: input, shape index: {}]   ;;  %s583_s2 = inlined_call_operand.<no memory space> [shape: f32[1], index: 2, kind: input, shape index: {}]   ;;  %s584_s3 = inlined_call_operand.<no memory space> [shape: f32[1], index: 3, kind: input, shape index: {}]   ;;  %s585_s4 = inlined_call_operand.hbm [shape: f32[8,128], index: 4, kind: input, shape index: {}]   ;;  %s586_s5 = inlined_call_operand.hbm [shape: f32[1], index: 5, kind: output, shape index: {0}]   ;;  %s587_s6 = inlined_call_operand.hbm [shape: s32[1], index: 6, kind: output, shape index: {1}]  }
   0x1   :  { %17 = vsyncpa [#allocation8], 0 }
   0x2   :  { %18 = vsyncpa [#allocation11], 0  ;;  %s32_s23 = sshll.u32 %s585_s4, 4  ;;  %s464_s24 = smov [#allocation6]   ;;  %s33_s23 = int_to_ptr.hbm [resolvable:$true] %s32_s23 }
   0x3   :  { %s34_s25 = sshll.u32 %s464_s24, 4  ;;  %s35_s25 = int_to_ptr.vmem [resolvable:$true] %s34_s25 }
   0x4   :  { %37 = dma.hbm_to_vmem [thread:$0]  %s33_s23, 128, %s35_s25, [#allocation7]  }
   0x5   :  { %434 = dma.done.wait [#allocation7], 128  }
   0x6   :  { %435 = vsyncadd [#allocation7], 4294967168  ;;  %s46_s28 = ssub.f32 0.0, %s582_s1  ;;  %v50_v1 = vld [vmem:[#allocation6] sm:$0xff] }
   0x8   :  { %s47_s7 = smul.f32 %s46_s28, %s583_s2  ;;  %v51_v0 = vstv %s46_s28 }
   0x9   :  { %s48_s10 = smul.f32 %s46_s28, %s584_s3  ;;  %v52_v3 = vmul.f32 %v51_v0, %v50_v1  ;;  %s517_s28 = smov 0  }
   0xb   :  { %s49_s4 = smax.f32 %s48_s10, %s47_s7  ;;  %s588_s7 = smov %s582_s1 }
   0xc   :  { %v53_v2 = vstv %s49_s4  ;;  %s71_s11 = ssub.f32 0.0, %s49_s4 }
   0xd   :  { %v54_v4 = vsub.f32 %v52_v3, %v53_v2 }
   0xe   :  { %v72_v9 = vstv %s71_s11 }
   0xf   :  { %v55_v5 = vmul.f32 1.442695, %v54_v4  ;;  %v73_v12 = vmul.f32 1.442695, %v72_v9 }
  0x11   :  { %348 = vpow2.f32 %v55_v5 }
  0x12   :  { %350 = vpow2.f32 %v73_v12 }
  0x17   :  { %v349_v6 = vpop.eup %348 }
  0x18   :  { %62 = vadd.xlane.f32.xlu0 %v349_v6  ;;  %v57_v7 = vmul.f32 %v349_v6, %v50_v1  ;;  %v351_v17 = vpop.eup %350 }
  0x1a   :  { %v60_v8 = vmul.f32 %v57_v7, %v50_v1 }
  0x1c   :  { %88 = vadd.xlane.f32.xlu1 %v60_v8 }
  0x20   :  { %79 = vadd.xlane.f32.xlu0 %v57_v7 }
  0x8b   :  { %v63_v10 = vpop.xlane.xlu0 %62 }
  0x8c   :  { %v64_v11 = vrot.slane %v63_v10, 4 }
  0x8e   :  { %v65_v13 = vadd.f32 %v64_v11, %v63_v10 }
  0x8f   :  { %v89_v20 = vpop.xlane.xlu1 %88 }
  0x90   :  { %v66_v14 = vrot.slane %v65_v13, 2  ;;  %v90_v22 = vrot.slane %v89_v20, 4 }
  0x92   :  { %v67_v15 = vadd.f32 %v66_v14, %v65_v13  ;;  %v91_v24 = vadd.f32 %v90_v22, %v89_v20 }
  0x93   :  { %v80_v19 = vpop.xlane.xlu0 %79 }
  0x94   :  { %v68_v16 = vrot.slane %v67_v15, 1  ;;  %v81_v21 = vrot.slane %v80_v19, 4  ;;  %v92_v26 = vrot.slane %v91_v24, 2 }
  0x96   :  { %v69_v18 = vadd.f32 %v68_v16, %v67_v15  ;;  %v82_v23 = vadd.f32 %v81_v21, %v80_v19  ;;  %v93_v28 = vadd.f32 %v92_v26, %v91_v24 }
  0x98   :  { %275 = vpush %v69_v18  ;;  %v83_v25 = vrot.slane %v82_v23, 2  ;;  %v94_v30 = vrot.slane %v93_v28, 1 }
  0x99   :  { %277 = vpush %v351_v17 }
  0x9a   :  { %v84_v27 = vadd.f32 %v83_v25, %v82_v23  ;;  %v95_v32 = vadd.f32 %v94_v30, %v93_v28 }
  0x9c   :  { %v85_v29 = vrot.slane %v84_v27, 1 }
  0x9e   :  { %v86_v31 = vadd.f32 %v85_v29, %v84_v27 }
  0xa0   :  { %279 = vpush %v86_v31 }
  0xa1   :  { %281 = vpush %v95_v32 }
  0xc9   :  { %s276_s12 = spop %275 }
  0xca   :  { %s278_s13 = spop %277 }
  0xcb   :  { %s77_s14 = smul.f32 768.0, %s278_s13 }
  0xcd   :  { %s78_s15 = ssub.f32 %s276_s12, %s77_s14 }
  0xcf   :  { %v97_v33 = vstv %s78_s15 }
  0xd0   :  { %352 = vrcp.f32 %v97_v33  ;;  %v109_v37 = vand.u32 2147483648, %v97_v33  ;;  %v107_v39 = vand.u32 2147483647, %v97_v33  ;;  %vm103_vm1 = vweird.f32 %v97_v33 }
  0xd1   :  { %s280_s16 = spop %279 }
  0xd2   :  { %v110_v41 = vor.u32 1.1754944e-38, %v109_v37  ;;  %vm108_vm3 = vcmp.eq.f32.partialorder %v107_v39, 8.507059e+37  ;;  %s282_s17 = spop %281 }
  0xd6   :  { %v353_v34 = vpop.eup %352 }
  0xd7   :  { %v99_v35 = vmul.f32 %v353_v34, %v97_v33  ;;  %vm104_vm0 = vweird.f32 %v353_v34 }
  0xd8   :  { %vm105_vm2 = vmor %vm103_vm1, %vm104_vm0 }
  0xd9   :  { %v100_v36 = vsub.f32 1.0, %v99_v35 }
  0xdb   :  { %v101_v38 = vmul.f32 %v353_v34, %v100_v36 }
  0xdd   :  { %v102_v40 = vadd.f32 %v353_v34, %v101_v38 }
  0xdf   :  { %v106_v42 = vsel %vm105_vm2, %v353_v34, %v102_v40 }
  0xe0   :  { %v111_v43 = vsel %vm108_vm3, %v110_v41, %v106_v42 }
  0xe1   :  { %283 = vpush %v111_v43 }
 0x112   :  { %s284_s18 = spop %283 }
 0x113   :  { %s113_s19 = smul.f32 %s284_s18, %s280_s16 }
 0x114   :  { %s116_s20 = smul.f32 %s284_s18, %s282_s17 }
 0x115   :  { %s114_s23 = ssub.f32 %s581_s0, %s113_s19 }
 0x116   :  { %s117_s24 = sadd.f32 1.0, %s116_s20 }
 0x117   :  { %s115_s25 = smul.f32 2.7182817, %s114_s23  }
 0x118   :  { %s118_s26 = smul.f32 2.7182817, %s117_s24  }
 0x119   :  { %s261_s27 = sand.u32 2147483647, %s115_s25 }
 0x11a   :  { %p262_p0 = scmp.gt.f32.partialorder %s261_s27, 1e-06 }
 0x11b   :  { %s524_s8 = smov (%p262_p0), 0  }
 0x11c   :  { %265 = sbr.rel (!%p262_p0) target bundleno = 647 (0x287), region = 55 }
 0x121 LB: > { %v131_v44 = vstv %s446_s26  ;;  %v153_v55 = vld [vmem:[#allocation6] sm:$0xff]  ;;  %s551_s8 = sadd.s32 1, %s442_s8   ;;  %s454_s1 = sphi %s582_s1, %s592_s1   ;;  %s450_s25 = sphi %s115_s25, %s218_s25   ;;  %s446_s26 = sphi %s118_s26, %s221_s26   ;;  %s442_s8 = sphi %s524_s8, %s591_s8  }
 0x122   : > { %354 = vrcp.f32 %v131_v44  ;;  %v143_v47 = vand.u32 2147483648, %v131_v44  ;;  %vm137_vm4 = vweird.f32 %v131_v44  ;;  %v141_v49 = vand.u32 2147483647, %v131_v44  ;;  %s590_s21 = smov %s551_s8 }
 0x123   : > { %p126_p1 = scmp.le.s32.totalorder %s590_s21, 100  ;;  %s591_s8 = smov %s590_s21 }
 0x124   : > { %v144_v51 = vor.u32 1.1754944e-38, %v143_v47  ;;  %vm142_vm7 = vcmp.eq.f32.partialorder %v141_v49, 8.507059e+37 }
 0x128   : > { %v355_v45 = vpop.eup %354 }
 0x129   : > { %v133_v46 = vmul.f32 %v355_v45, %v131_v44  ;;  %vm138_vm5 = vweird.f32 %v355_v45 }
 0x12a   : > { %vm139_vm6 = vmor %vm137_vm4, %vm138_vm5 }
 0x12b   : > { %v134_v48 = vsub.f32 1.0, %v133_v46 }
 0x12d   : > { %v135_v50 = vmul.f32 %v355_v45, %v134_v48 }
 0x12f   : > { %v136_v52 = vadd.f32 %v355_v45, %v135_v50 }
 0x131   : > { %v140_v53 = vsel %vm139_vm6, %v355_v45, %v136_v52 }
 0x132   : > { %v145_v54 = vsel %vm142_vm7, %v144_v51, %v140_v53 }
 0x133   : > { %285 = vpush %v145_v54 }
 0x164   : > { %s286_s4 = spop %285 }
 0x165   : > { %s147_s11 = smul.f32 %s450_s25, %s286_s4 }
 0x167   : > { %s541_s1 = ssub.f32 %s454_s1, %s147_s11  }
 0x169   : > { %s589_s12 = smov %s541_s1 }
 0x16a   : > { %s149_s13 = ssub.f32 0.0, %s589_s12 }
 0x16c   : > { %s150_s16 = smul.f32 %s149_s13, %s583_s2  ;;  %v154_v56 = vstv %s149_s13 }
 0x16d   : > { %s151_s19 = smul.f32 %s149_s13, %s584_s3  ;;  %v155_v57 = vmul.f32 %v154_v56, %v153_v55 }
 0x16f   : > { %s152_s20 = smax.f32 %s151_s19, %s150_s16 }
 0x170   : > { %v156_v58 = vstv %s152_s20  ;;  %s174_s1 = ssub.f32 0.0, %s152_s20 }
 0x171   : > { %v157_v59 = vsub.f32 %v155_v57, %v156_v58 }
 0x172   : > { %v175_v1 = vstv %s174_s1  ;;  %s592_s1 = smov %s589_s12 }
 0x173   : > { %v158_v60 = vmul.f32 1.442695, %v157_v59  ;;  %v176_v4 = vmul.f32 1.442695, %v175_v1 }
 0x175   : > { %356 = vpow2.f32 %v158_v60 }
 0x176   : > { %358 = vpow2.f32 %v176_v4 }
 0x17b   : > { %v357_v61 = vpop.eup %356 }
 0x17c   : > { %165 = vadd.xlane.f32.xlu0 %v357_v61  ;;  %v160_v62 = vmul.f32 %v357_v61, %v153_v55  ;;  %v359_v17 = vpop.eup %358 }
 0x17e   : > { %v163_v63 = vmul.f32 %v160_v62, %v153_v55 }
 0x180   : > { %191 = vadd.xlane.f32.xlu1 %v163_v63 }
 0x184   : > { %182 = vadd.xlane.f32.xlu0 %v160_v62 }
 0x1ef   : > { %v166_v0 = vpop.xlane.xlu0 %165 }
 0x1f0   : > { %v167_v2 = vrot.slane %v166_v0, 4 }
 0x1f2   : > { %v168_v3 = vadd.f32 %v167_v2, %v166_v0 }
 0x1f3   : > { %v192_v5 = vpop.xlane.xlu1 %191 }
 0x1f4   : > { %v169_v6 = vrot.slane %v168_v3, 2  ;;  %v193_v7 = vrot.slane %v192_v5, 4 }
 0x1f6   : > { %v194_v8 = vadd.f32 %v193_v7, %v192_v5  ;;  %v170_v9 = vadd.f32 %v169_v6, %v168_v3 }
 0x1f7   : > { %v183_v10 = vpop.xlane.xlu0 %182 }
 0x1f8   : > { %v195_v11 = vrot.slane %v194_v8, 2  ;;  %v184_v12 = vrot.slane %v183_v10, 4  ;;  %v171_v13 = vrot.slane %v170_v9, 1 }
 0x1fa   : > { %v185_v14 = vadd.f32 %v184_v12, %v183_v10  ;;  %v172_v15 = vadd.f32 %v171_v13, %v170_v9  ;;  %v196_v16 = vadd.f32 %v195_v11, %v194_v8 }
 0x1fc   : > { %v186_v18 = vrot.slane %v185_v14, 2  ;;  %287 = vpush %v172_v15  ;;  %v197_v20 = vrot.slane %v196_v16, 1 }
 0x1fd   : > { %289 = vpush %v359_v17 }
 0x1fe   : > { %v187_v19 = vadd.f32 %v186_v18, %v185_v14  ;;  %v198_v23 = vadd.f32 %v197_v20, %v196_v16 }
 0x200   : > { %v188_v21 = vrot.slane %v187_v19, 1 }
 0x202   : > { %v189_v22 = vadd.f32 %v188_v21, %v187_v19 }
 0x204   : > { %291 = vpush %v189_v22 }
 0x205   : > { %293 = vpush %v198_v23 }
 0x22d   : > { %s288_s22 = spop %287 }
 0x22e   : > { %s290_s23 = spop %289 }
 0x22f   : > { %s180_s24 = smul.f32 768.0, %s290_s23 }
 0x231   : > { %s181_s25 = ssub.f32 %s288_s22, %s180_s24 }
 0x233   : > { %v200_v24 = vstv %s181_s25 }
 0x234   : > { %360 = vrcp.f32 %v200_v24  ;;  %v212_v28 = vand.u32 2147483648, %v200_v24  ;;  %v210_v30 = vand.u32 2147483647, %v200_v24  ;;  %vm206_vm9 = vweird.f32 %v200_v24 }
 0x235   : > { %s292_s26 = spop %291 }
 0x236   : > { %v213_v32 = vor.u32 1.1754944e-38, %v212_v28  ;;  %vm211_vm11 = vcmp.eq.f32.partialorder %v210_v30, 8.507059e+37  ;;  %s294_s27 = spop %293 }
 0x23a   : > { %v361_v25 = vpop.eup %360 }
 0x23b   : > { %v202_v26 = vmul.f32 %v361_v25, %v200_v24  ;;  %vm207_vm8 = vweird.f32 %v361_v25 }
 0x23c   : > { %vm208_vm10 = vmor %vm206_vm9, %vm207_vm8 }
 0x23d   : > { %v203_v27 = vsub.f32 1.0, %v202_v26 }
 0x23f   : > { %v204_v29 = vmul.f32 %v361_v25, %v203_v27 }
 0x241   : > { %v205_v31 = vadd.f32 %v361_v25, %v204_v29 }
 0x243   : > { %v209_v33 = vsel %vm208_vm10, %v361_v25, %v205_v31 }
 0x244   : > { %v214_v34 = vsel %vm211_vm11, %v213_v32, %v209_v33 }
 0x245   : > { %295 = vpush %v214_v34 }
 0x276   : > { %s296_s28 = spop %295 }
 0x277   : > { %s216_s29 = smul.f32 %s296_s28, %s292_s26 }
 0x278   : > { %s219_s30 = smul.f32 %s296_s28, %s294_s27 }
 0x279   : > { %s217_s9 = ssub.f32 %s581_s0, %s216_s29 }
 0x27a   : > { %s220_s10 = sadd.f32 1.0, %s219_s30 }
 0x27b   : > { %s218_s25 = smul.f32 2.7182817, %s217_s9  }
 0x27c   : > { %s221_s26 = smul.f32 2.7182817, %s220_s10  }
 0x27d   : > { %s124_s4 = sand.u32 2147483647, %s218_s25 }
 0x27e   : > { %p125_p2 = scmp.gt.f32.partialorder %s124_s4, 1e-06 }
 0x280   : > { %p127_p3 = pnand %p126_p1, %p125_p2 }
 0x281   :  { %s593_s28 = smov (%p127_p3), %s590_s21  ;;  %s594_s7 = smov (%p127_p3), %s589_s12 }
 0x282   :  { %130 = sbr.rel (!%p127_p3) target bundleno = 289 (0x121), region = 61 }
 0x287 PF:  { %224 = sst [smem:[#allocation9]] %s462_s7  ;;  %s232_s14 = sshll.u32 %s586_s5, 4  ;;  %s462_s7 = sphi %s588_s7, %s594_s7   ;;  %s458_s28 = sphi %s517_s28, %s593_s28   ;;  %s233_s14 = int_to_ptr.hbm [resolvable:$true] %s232_s14 }
 0x288   :  { %s465_s15 = smov [#allocation9]   ;;  %226 = sst [smem:[#allocation10]] %s458_s28 }
 0x289   :  { %235 = dma.smem_to_hbm %s465_s15, 16, %s233_s14, [#allocation8]  }
 0x28a   :  { %s241_s3 = sshll.u32 %s587_s6, 4  ;;  %s466_s12 = smov [#allocation10]   ;;  %s242_s3 = int_to_ptr.hbm [resolvable:$true] %s241_s3 }
 0x28b   :  { %244 = dma.smem_to_hbm %s466_s12, 16, %s242_s3, [#allocation11]  }
 0x28c   :  { %436 = dma.done.wait [#allocation8], 16  }
 0x28d   :  { %437 = vsyncadd [#allocation8], 4294967280 }
 0x28e   :  { %438 = dma.done.wait [#allocation11], 16  }
 0x28f   :  { %439 = vsyncadd [#allocation11], 4294967280 }
 0x290   :  { %253 = sfence }
 0x291   :  { %254 = vsyncpa [#allocation7], 1 }
 0x292   :  { %255 = vsyncpa [#allocation8], 1 }
 0x293   :  { %256 = vsyncpa [#allocation11], 1 }

</bundles_post_ra>
